<compile_context>
chip_gen: v5e
topology: v5e:2x2
jax: 0.10.0
libtpu: 0.0.40
codegen_flags: <defaults>
</compile_context>

<pallas_src>
import jax
import jax.numpy as jnp
from jax.experimental import pallas as pl
from jax.experimental.pallas import tpu as pltpu

IN_SIZE = 16
HIDDEN = 32
LEAKY_SLOPE = 0.01   # nn.LeakyReLU default
LN_EPS = 1e-5        # nn.LayerNorm default


def mlp_kernel(x_ref, w1_ref, w2_ref, w3_ref, aux_ref, o_ref):
    # x_ref:   (IN_SIZE, tn)        features on sublanes, rows (N) on lanes
    # w*_ref:  (out, in)            PyTorch layout, matmul dtype (bf16 default)
    # aux_ref: (3, 3, HIDDEN, 1)    [layer, {bias, gamma, beta}, feature, 1] f32
    # o_ref:   (HIDDEN, tn)
    w_refs = (w1_ref, w2_ref, w3_ref)
    h = x_ref[...]
    for layer in range(3):
        w = w_refs[layer][...]
        # Linear: (out, in) @ (in, tn) -> (out, tn); lane-dense MXU output,
        # low-precision operands with f32 accumulation.
        y = jnp.dot(w, h.astype(w.dtype), preferred_element_type=jnp.float32)
        y = y + aux_ref[layer, 0]                          # bias, (HIDDEN, 1)

        # Single-pass LayerNorm over the feature (sublane) axis: independent
        # sum / sum-of-squares reductions, biased variance, no centered temp.
        mean = jnp.sum(y, axis=0, keepdims=True) * (1.0 / HIDDEN)
        mean_sq = jnp.sum(y * y, axis=0, keepdims=True) * (1.0 / HIDDEN)
        var = mean_sq - mean * mean
        inv = jax.lax.rsqrt(var + LN_EPS)                  # EUP slot
        y = (y - mean) * inv
        y = y * aux_ref[layer, 1] + aux_ref[layer, 2]      # gamma, beta

        # LeakyReLU(y) == max(y, slope*y) for 0 < slope < 1.
        h = jnp.maximum(y, LEAKY_SLOPE * y)

    o_ref[...] = h.astype(o_ref.dtype)


def _choose_tn(n, tn_req):
    """Lane-tile size: full extent for tiny N; otherwise a multiple of 128
    picked so the 1-D grid has >= 2 roughly balanced steps (lets v7x shard the
    "parallel" axis across its two TensorCores)."""
    if n <= 256:
        return n                                   # single full-extent block
    tn_req = max(128, (tn_req // 128) * 128)
    n_steps = max(2, pl.cdiv(n, tn_req))
    return min(tn_req, pl.cdiv(pl.cdiv(n, n_steps), 128) * 128)


def pack_mlp_params(params, mm_dtype=jnp.bfloat16):
    """Weights in PyTorch (out, in) layout cast to the matmul dtype; bias,
    gamma, beta packed into one small f32 ref, indexed statically in-kernel."""
    w1 = params[0]["w"].astype(mm_dtype)
    w2 = params[1]["w"].astype(mm_dtype)
    w3 = params[2]["w"].astype(mm_dtype)
    aux = jnp.stack(
        [jnp.stack([p["b"], p["gamma"], p["beta"]]) for p in params]
    ).astype(jnp.float32)[..., None]               # (3, 3, HIDDEN, 1)
    return w1, w2, w3, aux


def mlp_pallas(x_fm, params, *, tn=16384, mm_dtype=jnp.bfloat16):
    """Fused MLP forward.

    x_fm: (IN_SIZE, N) float32, feature-major (N = batch*seq on lanes).
    Returns (HIDDEN, N) float32.
    """
    f, n = x_fm.shape
    assert f == IN_SIZE
    w1, w2, w3, aux = pack_mlp_params(params, mm_dtype)

    tn = _choose_tn(n, tn)
    grid = (pl.cdiv(n, tn),)     # ragged tail handled by edge-block masking

    return pl.pallas_call(
        mlp_kernel,
        out_shape=jax.ShapeDtypeStruct((HIDDEN, n), jnp.float32),
        grid_spec=pltpu.PrefetchScalarGridSpec(
            num_scalar_prefetch=0,
            grid=grid,
            in_specs=[
                pl.BlockSpec((IN_SIZE, tn), lambda i: (0, i)),
                pl.BlockSpec((HIDDEN, IN_SIZE), lambda i: (0, 0)),
                pl.BlockSpec((HIDDEN, HIDDEN), lambda i: (0, 0)),
                pl.BlockSpec((HIDDEN, HIDDEN), lambda i: (0, 0)),
                pl.BlockSpec((3, 3, HIDDEN, 1), lambda i: (0, 0, 0, 0)),
            ],
            out_specs=pl.BlockSpec((HIDDEN, tn), lambda i: (0, i)),
        ),
        compiler_params=pltpu.CompilerParams(
            dimension_semantics=("parallel",),
            # Above v5e's 16 MiB default scoped limit, below every
            # generation's physical VMEM (v7x: 64 MiB); keeps tn up to ~16-32k
            # safe with double-buffered lane-dense blocks.
            vmem_limit_bytes=48 * 1024 * 1024,
        ),
    )(x_fm, w1, w2, w3, aux)


def make_params(key):
    """Deterministic synthetic parameters matching the PyTorch module shapes."""
    params = []
    sizes = [(IN_SIZE, HIDDEN), (HIDDEN, HIDDEN), (HIDDEN, HIDDEN)]
    for i, (fin, fout) in enumerate(sizes):
        kw, kb = jax.random.split(jax.random.fold_in(key, i))
        bound = 1.0 / jnp.sqrt(fin)
        params.append({
            "w": jax.random.uniform(kw, (fout, fin), jnp.float32, -bound, bound),
            "b": jax.random.uniform(kb, (fout,), jnp.float32, -bound, bound),
            "gamma": jnp.ones((fout,), jnp.float32),   # nn.LayerNorm default init
            "beta": jnp.zeros((fout,), jnp.float32),
        })
    return params


def mlp_reference(x2d, params, mm_dtype=jnp.float32):
    """Pure-JAX reference in the standard (rows, features) orientation."""
    h = x2d
    for p in params:
        y = jnp.dot(h.astype(mm_dtype), p["w"].T.astype(mm_dtype),
                    preferred_element_type=jnp.float32) + p["b"]
        mean = jnp.mean(y, axis=-1, keepdims=True)
        var = jnp.mean((y - mean) ** 2, axis=-1, keepdims=True)
        y = (y - mean) / jnp.sqrt(var + LN_EPS)
        y = y * p["gamma"] + p["beta"]
        h = jnp.where(y >= 0, y, LEAKY_SLOPE * y)
    return h


if __name__ == "__main__":
    key = jax.random.PRNGKey(0)
    kx, kp = jax.random.split(key)

    B, T = 2, 8                      # MLP is applied per (batch, seq) row
    params = make_params(kp)

    # Feature-major activations (in_size, batch*seq); the surrounding decoder
    # keeps this layout so no transposes surround the kernel call.
    x_fm = jax.random.normal(kx, (IN_SIZE, B * T), jnp.float32)

    # Default fast path (bf16 matmuls) vs a bf16-matched reference: validates
    # the kernel math itself (layout, LN, LeakyReLU) to tight tolerance.
    out_fm = mlp_pallas(x_fm, params)
    jax.block_until_ready(out_fm)
    assert out_fm.shape == (HIDDEN, B * T)
    ref_bf16 = mlp_reference(x_fm.T, params, mm_dtype=jnp.bfloat16)
    assert jnp.allclose(out_fm.T, ref_bf16, atol=5e-3, rtol=5e-3), \
        "bf16-matmul kernel mismatch vs bf16-matmul reference"

    # Exact path (f32 matmuls) vs the full-f32 reference: module semantics.
    out_fm_f32 = mlp_pallas(x_fm, params, mm_dtype=jnp.float32)
    jax.block_until_ready(out_fm_f32)
    ref_f32 = mlp_reference(x_fm.T, params, mm_dtype=jnp.float32)
    assert jnp.allclose(out_fm_f32.T, ref_f32, atol=1e-4, rtol=1e-4), \
        "f32 kernel mismatch vs f32 reference"

    print("KERNEL_OK")
</pallas_src>

<mosaic_0001>
module attributes {stable_mosaic.version = 11 : i64} {
  func.func @mlp_kernel(%arg0: i32, %arg1: memref<16x16xf32, #tpu.memory_space<vmem>>, %arg2: memref<32x16xbf16, #tpu.memory_space<vmem>>, %arg3: memref<32x32xbf16, #tpu.memory_space<vmem>>, %arg4: memref<32x32xbf16, #tpu.memory_space<vmem>>, %arg5: memref<3x3x32x1xf32, #tpu.memory_space<vmem>>, %arg6: memref<32x16xf32, #tpu.memory_space<vmem>>) attributes {dimension_semantics = [#tpu.dimension_semantics<parallel>], iteration_bounds = array<i64: 1>, scalar_prefetch = 0 : i64, scratch_operands = 0 : i64, tpu.core_type = #tpu.core_type<tc>, window_params = [{transform_indices = @transform_0, window_bounds = array<i64: 16, 16>}, {pipeline_mode = #tpu.pipeline_mode<synchronous>, transform_indices = @transform_1, window_bounds = array<i64: 32, 16>}, {pipeline_mode = #tpu.pipeline_mode<synchronous>, transform_indices = @transform_2, window_bounds = array<i64: 32, 32>}, {pipeline_mode = #tpu.pipeline_mode<synchronous>, transform_indices = @transform_3, window_bounds = array<i64: 32, 32>}, {pipeline_mode = #tpu.pipeline_mode<synchronous>, transform_indices = @transform_4, window_bounds = array<i64: 3, 3, 32, 1>}, {transform_indices = @transform_5, window_bounds = array<i64: 32, 16>}]} {
    %c0 = arith.constant 0 : index
    %c0_0 = arith.constant 0 : index
    %0 = vector.load %arg1[%c0, %c0_0] : memref<16x16xf32, #tpu.memory_space<vmem>>, vector<16x16xf32>
    %c0_1 = arith.constant 0 : index
    %c0_2 = arith.constant 0 : index
    %1 = vector.load %arg2[%c0_1, %c0_2] : memref<32x16xbf16, #tpu.memory_space<vmem>>, vector<32x16xbf16>
    %2 = arith.truncf %0 : vector<16x16xf32> to vector<16x16xbf16>
    %cst = arith.constant dense<0.000000e+00> : vector<32x16xf32>
    %3 = tpu.matmul %1, %2, %cst {dimension_numbers = #tpu.dot_dimension_numbers<[1], [0], [0], [1], [0, 0, 1, 1], [], []>} : vector<32x16xbf16>, vector<16x16xbf16>, vector<32x16xf32> -> vector<32x16xf32>
    %c0_3 = arith.constant 0 : index
    %c0_4 = arith.constant 0 : index
    %c0_5 = arith.constant 0 : index
    %c0_6 = arith.constant 0 : index
    %4 = vector.load %arg5[%c0_3, %c0_4, %c0_5, %c0_6] : memref<3x3x32x1xf32, #tpu.memory_space<vmem>>, vector<1x1x32x1xf32>
    %5 = vector.shape_cast %4 : vector<1x1x32x1xf32> to vector<32x1xf32>
    %6 = vector.broadcast %5 : vector<32x1xf32> to vector<32x16xf32>
    %7 = arith.addf %3, %6 : vector<32x16xf32>
    %cst_7 = arith.constant dense<0.000000e+00> : vector<16xf32>
    %8 = vector.multi_reduction <add>, %7, %cst_7 [0] : vector<32x16xf32> to vector<16xf32>
    %9 = vector.shape_cast %8 : vector<16xf32> to vector<1x16xf32>
    %cst_8 = arith.constant 3.125000e-02 : f32
    %10 = vector.broadcast %cst_8 : f32 to vector<1x16xf32>
    %11 = arith.mulf %9, %10 : vector<1x16xf32>
    %12 = arith.mulf %7, %7 : vector<32x16xf32>
    %cst_9 = arith.constant dense<0.000000e+00> : vector<16xf32>
    %13 = vector.multi_reduction <add>, %12, %cst_9 [0] : vector<32x16xf32> to vector<16xf32>
    %14 = vector.shape_cast %13 : vector<16xf32> to vector<1x16xf32>
    %cst_10 = arith.constant 3.125000e-02 : f32
    %15 = vector.broadcast %cst_10 : f32 to vector<1x16xf32>
    %16 = arith.mulf %14, %15 : vector<1x16xf32>
    %17 = arith.mulf %11, %11 : vector<1x16xf32>
    %18 = arith.subf %16, %17 : vector<1x16xf32>
    %cst_11 = arith.constant 9.99999974E-6 : f32
    %19 = vector.broadcast %cst_11 : f32 to vector<1x16xf32>
    %20 = arith.addf %18, %19 : vector<1x16xf32>
    %21 = math.rsqrt %20 : vector<1x16xf32>
    %22 = vector.broadcast %11 : vector<1x16xf32> to vector<32x16xf32>
    %23 = arith.subf %7, %22 : vector<32x16xf32>
    %24 = vector.broadcast %21 : vector<1x16xf32> to vector<32x16xf32>
    %25 = arith.mulf %23, %24 : vector<32x16xf32>
    %c0_12 = arith.constant 0 : index
    %c1 = arith.constant 1 : index
    %c0_13 = arith.constant 0 : index
    %c0_14 = arith.constant 0 : index
    %26 = vector.load %arg5[%c0_12, %c1, %c0_13, %c0_14] : memref<3x3x32x1xf32, #tpu.memory_space<vmem>>, vector<1x1x32x1xf32>
    %27 = vector.shape_cast %26 : vector<1x1x32x1xf32> to vector<32x1xf32>
    %28 = vector.broadcast %27 : vector<32x1xf32> to vector<32x16xf32>
    %29 = arith.mulf %25, %28 : vector<32x16xf32>
    %c0_15 = arith.constant 0 : index
    %c2 = arith.constant 2 : index
    %c0_16 = arith.constant 0 : index
    %c0_17 = arith.constant 0 : index
    %30 = vector.load %arg5[%c0_15, %c2, %c0_16, %c0_17] : memref<3x3x32x1xf32, #tpu.memory_space<vmem>>, vector<1x1x32x1xf32>
    %31 = vector.shape_cast %30 : vector<1x1x32x1xf32> to vector<32x1xf32>
    %32 = vector.broadcast %31 : vector<32x1xf32> to vector<32x16xf32>
    %33 = arith.addf %29, %32 : vector<32x16xf32>
    %cst_18 = arith.constant 0.00999999977 : f32
    %34 = vector.broadcast %cst_18 : f32 to vector<32x16xf32>
    %35 = arith.mulf %34, %33 : vector<32x16xf32>
    %36 = arith.maximumf %33, %35 : vector<32x16xf32>
    %c0_19 = arith.constant 0 : index
    %c0_20 = arith.constant 0 : index
    %37 = vector.load %arg3[%c0_19, %c0_20] : memref<32x32xbf16, #tpu.memory_space<vmem>>, vector<32x32xbf16>
    %38 = arith.truncf %36 : vector<32x16xf32> to vector<32x16xbf16>
    %cst_21 = arith.constant dense<0.000000e+00> : vector<32x16xf32>
    %39 = tpu.matmul %37, %38, %cst_21 {dimension_numbers = #tpu.dot_dimension_numbers<[1], [0], [0], [1], [0, 0, 1, 1], [], []>} : vector<32x32xbf16>, vector<32x16xbf16>, vector<32x16xf32> -> vector<32x16xf32>
    %c1_22 = arith.constant 1 : index
    %c0_23 = arith.constant 0 : index
    %c0_24 = arith.constant 0 : index
    %c0_25 = arith.constant 0 : index
    %40 = vector.load %arg5[%c1_22, %c0_23, %c0_24, %c0_25] : memref<3x3x32x1xf32, #tpu.memory_space<vmem>>, vector<1x1x32x1xf32>
    %41 = vector.shape_cast %40 : vector<1x1x32x1xf32> to vector<32x1xf32>
    %42 = vector.broadcast %41 : vector<32x1xf32> to vector<32x16xf32>
    %43 = arith.addf %39, %42 : vector<32x16xf32>
    %cst_26 = arith.constant dense<0.000000e+00> : vector<16xf32>
    %44 = vector.multi_reduction <add>, %43, %cst_26 [0] : vector<32x16xf32> to vector<16xf32>
    %45 = vector.shape_cast %44 : vector<16xf32> to vector<1x16xf32>
    %cst_27 = arith.constant 3.125000e-02 : f32
    %46 = vector.broadcast %cst_27 : f32 to vector<1x16xf32>
    %47 = arith.mulf %45, %46 : vector<1x16xf32>
    %48 = arith.mulf %43, %43 : vector<32x16xf32>
    %cst_28 = arith.constant dense<0.000000e+00> : vector<16xf32>
    %49 = vector.multi_reduction <add>, %48, %cst_28 [0] : vector<32x16xf32> to vector<16xf32>
    %50 = vector.shape_cast %49 : vector<16xf32> to vector<1x16xf32>
    %cst_29 = arith.constant 3.125000e-02 : f32
    %51 = vector.broadcast %cst_29 : f32 to vector<1x16xf32>
    %52 = arith.mulf %50, %51 : vector<1x16xf32>
    %53 = arith.mulf %47, %47 : vector<1x16xf32>
    %54 = arith.subf %52, %53 : vector<1x16xf32>
    %cst_30 = arith.constant 9.99999974E-6 : f32
    %55 = vector.broadcast %cst_30 : f32 to vector<1x16xf32>
    %56 = arith.addf %54, %55 : vector<1x16xf32>
    %57 = math.rsqrt %56 : vector<1x16xf32>
    %58 = vector.broadcast %47 : vector<1x16xf32> to vector<32x16xf32>
    %59 = arith.subf %43, %58 : vector<32x16xf32>
    %60 = vector.broadcast %57 : vector<1x16xf32> to vector<32x16xf32>
    %61 = arith.mulf %59, %60 : vector<32x16xf32>
    %c1_31 = arith.constant 1 : index
    %c1_32 = arith.constant 1 : index
    %c0_33 = arith.constant 0 : index
    %c0_34 = arith.constant 0 : index
    %62 = vector.load %arg5[%c1_31, %c1_32, %c0_33, %c0_34] : memref<3x3x32x1xf32, #tpu.memory_space<vmem>>, vector<1x1x32x1xf32>
    %63 = vector.shape_cast %62 : vector<1x1x32x1xf32> to vector<32x1xf32>
    %64 = vector.broadcast %63 : vector<32x1xf32> to vector<32x16xf32>
    %65 = arith.mulf %61, %64 : vector<32x16xf32>
    %c1_35 = arith.constant 1 : index
    %c2_36 = arith.constant 2 : index
    %c0_37 = arith.constant 0 : index
    %c0_38 = arith.constant 0 : index
    %66 = vector.load %arg5[%c1_35, %c2_36, %c0_37, %c0_38] : memref<3x3x32x1xf32, #tpu.memory_space<vmem>>, vector<1x1x32x1xf32>
    %67 = vector.shape_cast %66 : vector<1x1x32x1xf32> to vector<32x1xf32>
    %68 = vector.broadcast %67 : vector<32x1xf32> to vector<32x16xf32>
    %69 = arith.addf %65, %68 : vector<32x16xf32>
    %cst_39 = arith.constant 0.00999999977 : f32
    %70 = vector.broadcast %cst_39 : f32 to vector<32x16xf32>
    %71 = arith.mulf %70, %69 : vector<32x16xf32>
    %72 = arith.maximumf %69, %71 : vector<32x16xf32>
    %c0_40 = arith.constant 0 : index
    %c0_41 = arith.constant 0 : index
    %73 = vector.load %arg4[%c0_40, %c0_41] : memref<32x32xbf16, #tpu.memory_space<vmem>>, vector<32x32xbf16>
    %74 = arith.truncf %72 : vector<32x16xf32> to vector<32x16xbf16>
    %cst_42 = arith.constant dense<0.000000e+00> : vector<32x16xf32>
    %75 = tpu.matmul %73, %74, %cst_42 {dimension_numbers = #tpu.dot_dimension_numbers<[1], [0], [0], [1], [0, 0, 1, 1], [], []>} : vector<32x32xbf16>, vector<32x16xbf16>, vector<32x16xf32> -> vector<32x16xf32>
    %c2_43 = arith.constant 2 : index
    %c0_44 = arith.constant 0 : index
    %c0_45 = arith.constant 0 : index
    %c0_46 = arith.constant 0 : index
    %76 = vector.load %arg5[%c2_43, %c0_44, %c0_45, %c0_46] : memref<3x3x32x1xf32, #tpu.memory_space<vmem>>, vector<1x1x32x1xf32>
    %77 = vector.shape_cast %76 : vector<1x1x32x1xf32> to vector<32x1xf32>
    %78 = vector.broadcast %77 : vector<32x1xf32> to vector<32x16xf32>
    %79 = arith.addf %75, %78 : vector<32x16xf32>
    %cst_47 = arith.constant dense<0.000000e+00> : vector<16xf32>
    %80 = vector.multi_reduction <add>, %79, %cst_47 [0] : vector<32x16xf32> to vector<16xf32>
    %81 = vector.shape_cast %80 : vector<16xf32> to vector<1x16xf32>
    %cst_48 = arith.constant 3.125000e-02 : f32
    %82 = vector.broadcast %cst_48 : f32 to vector<1x16xf32>
    %83 = arith.mulf %81, %82 : vector<1x16xf32>
    %84 = arith.mulf %79, %79 : vector<32x16xf32>
    %cst_49 = arith.constant dense<0.000000e+00> : vector<16xf32>
    %85 = vector.multi_reduction <add>, %84, %cst_49 [0] : vector<32x16xf32> to vector<16xf32>
    %86 = vector.shape_cast %85 : vector<16xf32> to vector<1x16xf32>
    %cst_50 = arith.constant 3.125000e-02 : f32
    %87 = vector.broadcast %cst_50 : f32 to vector<1x16xf32>
    %88 = arith.mulf %86, %87 : vector<1x16xf32>
    %89 = arith.mulf %83, %83 : vector<1x16xf32>
    %90 = arith.subf %88, %89 : vector<1x16xf32>
    %cst_51 = arith.constant 9.99999974E-6 : f32
    %91 = vector.broadcast %cst_51 : f32 to vector<1x16xf32>
    %92 = arith.addf %90, %91 : vector<1x16xf32>
    %93 = math.rsqrt %92 : vector<1x16xf32>
    %94 = vector.broadcast %83 : vector<1x16xf32> to vector<32x16xf32>
    %95 = arith.subf %79, %94 : vector<32x16xf32>
    %96 = vector.broadcast %93 : vector<1x16xf32> to vector<32x16xf32>
    %97 = arith.mulf %95, %96 : vector<32x16xf32>
    %c2_52 = arith.constant 2 : index
    %c1_53 = arith.constant 1 : index
    %c0_54 = arith.constant 0 : index
    %c0_55 = arith.constant 0 : index
    %98 = vector.load %arg5[%c2_52, %c1_53, %c0_54, %c0_55] : memref<3x3x32x1xf32, #tpu.memory_space<vmem>>, vector<1x1x32x1xf32>
    %99 = vector.shape_cast %98 : vector<1x1x32x1xf32> to vector<32x1xf32>
    %100 = vector.broadcast %99 : vector<32x1xf32> to vector<32x16xf32>
    %101 = arith.mulf %97, %100 : vector<32x16xf32>
    %c2_56 = arith.constant 2 : index
    %c2_57 = arith.constant 2 : index
    %c0_58 = arith.constant 0 : index
    %c0_59 = arith.constant 0 : index
    %102 = vector.load %arg5[%c2_56, %c2_57, %c0_58, %c0_59] : memref<3x3x32x1xf32, #tpu.memory_space<vmem>>, vector<1x1x32x1xf32>
    %103 = vector.shape_cast %102 : vector<1x1x32x1xf32> to vector<32x1xf32>
    %104 = vector.broadcast %103 : vector<32x1xf32> to vector<32x16xf32>
    %105 = arith.addf %101, %104 : vector<32x16xf32>
    %cst_60 = arith.constant 0.00999999977 : f32
    %106 = vector.broadcast %cst_60 : f32 to vector<32x16xf32>
    %107 = arith.mulf %106, %105 : vector<32x16xf32>
    %108 = arith.maximumf %105, %107 : vector<32x16xf32>
    %c0_61 = arith.constant 0 : index
    %c0_62 = arith.constant 0 : index
    %109 = vector.load %arg6[%c0_61, %c0_62] : memref<32x16xf32, #tpu.memory_space<vmem>>, vector<32x16xf32>
    tpu.vector_store %arg6[%c0_61, %c0_62], %108 {strides = array<i32>} : memref<32x16xf32, #tpu.memory_space<vmem>>, vector<32x16xf32>,
    return
  }
  func.func @transform_0(%arg0: i32) -> (i32, i32) {
    %c0_i32 = arith.constant 0 : i32
    %c0_i32_0 = arith.constant 0 : i32
    return %c0_i32, %arg0 : i32, i32
  }
  func.func @transform_1(%arg0: i32) -> (i32, i32) {
    %c0_i32 = arith.constant 0 : i32
    %c0_i32_0 = arith.constant 0 : i32
    %c0_i32_1 = arith.constant 0 : i32
    return %c0_i32, %c0_i32_0 : i32, i32
  }
  func.func @transform_2(%arg0: i32) -> (i32, i32) {
    %c0_i32 = arith.constant 0 : i32
    %c0_i32_0 = arith.constant 0 : i32
    %c0_i32_1 = arith.constant 0 : i32
    return %c0_i32, %c0_i32_0 : i32, i32
  }
  func.func @transform_3(%arg0: i32) -> (i32, i32) {
    %c0_i32 = arith.constant 0 : i32
    %c0_i32_0 = arith.constant 0 : i32
    %c0_i32_1 = arith.constant 0 : i32
    return %c0_i32, %c0_i32_0 : i32, i32
  }
  func.func @transform_4(%arg0: i32) -> (i32, i32, i32, i32) {
    %c0_i32 = arith.constant 0 : i32
    %c0_i32_0 = arith.constant 0 : i32
    %c0_i32_1 = arith.constant 0 : i32
    %c0_i32_2 = arith.constant 0 : i32
    %c0_i32_3 = arith.constant 0 : i32
    return %c0_i32, %c0_i32_0, %c0_i32_1, %c0_i32_2 : i32, i32, i32, i32
  }
  func.func @transform_5(%arg0: i32) -> (i32, i32) {
    %c0_i32 = arith.constant 0 : i32
    %c0_i32_0 = arith.constant 0 : i32
    return %c0_i32, %arg0 : i32, i32
  }
}

</mosaic_0001>

<bundles_post_ra>
// kernel: tpu_custom_call.1
= control target key start
LH: loop header
LB: loop body
LE: loop exit
PB: predicated region body
PF: predicated region fallthrough
CT: control target
= control target key end

     0   :  { %v666_v0 = vmov 0   ;;  %vm62_vm0 = vcmask 130048   ;;  %vm248_vm4 = vcmask 261120   ;;  %s899_s4 = inlined_call_operand.vmem [shape: f32[3,3,32,1], index: 4, kind: input, shape index: {}]   ;;  %s900_s0 = inlined_call_operand.vmem [shape: f32[16,16], index: 0, kind: input, shape index: {}]   ;;  %s901_s1 = inlined_call_operand.vmem [shape: bf16[32,16], index: 1, kind: input, shape index: {}]   ;;  %s902_s2 = inlined_call_operand.vmem [shape: bf16[32,32], index: 2, kind: input, shape index: {}]   ;;  %s903_s3 = inlined_call_operand.vmem [shape: bf16[32,32], index: 3, kind: input, shape index: {}]   ;;  %s904_s5 = inlined_call_operand.vmem [shape: f32[32,16], index: 5, kind: output, shape index: {}]  }
   0x1   :  { %658 = vset.pattern.permute.xlu1 %v666_v0  ;;  %657 = vset.pattern.permute.xlu0 %v666_v0  ;;  %v30_v1 = vld [vmem:[%s899_s4 + $0x10] sm:$0xff]  ;;  %v28_v2 = vld [vmem:[%s899_s4] sm:$0xff]  ;;  %v22_v4 = vld [vmem:[%s900_s0 + $0x8] sm:$0xff] }
   0x2   :  { %v21_v3 = vld [vmem:[%s900_s0] sm:$0xff]  ;;  %44 = vperm.xlu1 %658, %v30_v1   ;;  %34 = vperm.xlu0 %657, %v28_v2   ;;  %v598_v5 = vld [vmem:[%s899_s4 + $0x30] sm:$0xff]  ;;  %v31_v8 = vld [vmem:[%s899_s4 + $0x18] sm:$0xff] }
   0x3   :  { %659 = vset.pattern.permute.xlu2 %v666_v0  ;;  %v27_v6 = vpack.c.bf16 %v22_v4, %v21_v3  ;;  %v648_v7 = vld [vmem:[%s901_s1] sm:$0xff]  ;;  %v29_v9 = vld [vmem:[%s899_s4 + $0x8] sm:$0xff]  ;;  %v599_v10 = vld [vmem:[%s899_s4 + $0x38] sm:$0xff] }
   0x4   :  { %158 = vperm.xlu2 %659, %v598_v5   ;;  %v603_v11 = vld [vmem:[%s899_s4 + $0x58] sm:$0xff]  ;;  %v602_v12 = vld [vmem:[%s899_s4 + $0x50] sm:$0xff]  ;;  %v596_v13 = vld [vmem:[%s899_s4 + $0x20] sm:$0xff] }
   0x5   :  { %76 = vmatpush.bf16.msra.mxu0 %v27_v6  ;;  %v649_v14 = vld [vmem:[%s901_s1 + $0x8] sm:$0xff]  ;;  %v600_v15 = vld [vmem:[%s899_s4 + $0x40] sm:$0xff]  ;;  %v606_v20 = vld [vmem:[%s899_s4 + $0x70] sm:$0xff] }
   0x6   :  { %v597_v16 = vld [vmem:[%s899_s4 + $0x28] sm:$0xff]  ;;  %v604_v19 = vld [vmem:[%s899_s4 + $0x60] sm:$0xff]  ;;  %v620_v21 = vld [vmem:[%s899_s4 + $0x90] sm:$0xff] }
   0x7   :  { %v601_v17 = vld [vmem:[%s899_s4 + $0x48] sm:$0xff]  ;;  %v607_v22 = vld [vmem:[%s899_s4 + $0x78] sm:$0xff]  ;;  %v624_v25 = vld [vmem:[%s899_s4 + $0xb0] sm:$0xff] }
   0x8   :  { %594 = vmatmul.msk.bf16.vlgmr.msra.gmra.mxu0 %vm62_vm0, %v648_v7  ;;  %v605_v18 = vld [vmem:[%s899_s4 + $0x68] sm:$0xff]  ;;  %v621_v23 = vld [vmem:[%s899_s4 + $0x98] sm:$0xff]  ;;  %v618_v26 = vld [vmem:[%s899_s4 + $0x80] sm:$0xff] }
   0x9   :  { %v625_v24 = vld [vmem:[%s899_s4 + $0xb8] sm:$0xff]  ;;  %v622_v27 = vld [vmem:[%s899_s4 + $0xa0] sm:$0xff]  ;;  %v619_v28 = vld [vmem:[%s899_s4 + $0x88] sm:$0xff] }
   0xa   :  { %49 = vperm.xlu1 %658, %v31_v8   ;;  %39 = vperm.xlu0 %657, %v29_v9   ;;  %v623_v29 = vld [vmem:[%s899_s4 + $0xa8] sm:$0xff]  ;;  %v626_v31 = vld [vmem:[%s899_s4 + $0xc0] sm:$0xff]  ;;  %v628_v32 = vld [vmem:[%s899_s4 + $0xd0] sm:$0xff] }
   0xb   :  { %v627_v30 = vld [vmem:[%s899_s4 + $0xc8] sm:$0xff]  ;;  %v640_v33 = vld [vmem:[%s899_s4 + $0xe0] sm:$0xff]  ;;  %v629_v34 = vld [vmem:[%s899_s4 + $0xd8] sm:$0xff] }
   0xc   :  { %163 = vperm.xlu2 %659, %v599_v10   ;;  %v641_v35 = vld [vmem:[%s899_s4 + $0xe8] sm:$0xff]  ;;  %v643_v36 = vld [vmem:[%s899_s4 + $0xf8] sm:$0xff]  ;;  %v642_v37 = vld [vmem:[%s899_s4 + $0xf0] sm:$0xff] }
   0xd   :  { %v644_v38 = vld [vmem:[%s899_s4 + $0x100] sm:$0xff]  ;;  %v646_v39 = vld [vmem:[%s899_s4 + $0x110] sm:$0xff]  ;;  %v645_v40 = vld [vmem:[%s899_s4 + $0x108] sm:$0xff] }
   0xe   :  { %v647_v41 = vld [vmem:[%s899_s4 + $0x118] sm:$0xff] }
  0x12   :  { %192 = vperm.xlu1 %658, %v603_v11   ;;  %187 = vperm.xlu0 %657, %v602_v12  }
  0x14   :  { %148 = vperm.xlu2 %659, %v596_v13  }
  0x18   :  { %595 = vmatmul.msk.bf16.gmra.mxu0 %vm62_vm0, %v649_v14 }
  0x1a   :  { %177 = vperm.xlu1 %658, %v600_v15   ;;  %153 = vperm.xlu0 %657, %v597_v16  }
  0x1c   :  { %182 = vperm.xlu2 %659, %v601_v17  }
  0x22   :  { %225 = vperm.xlu1 %658, %v605_v18   ;;  %220 = vperm.xlu0 %657, %v604_v19  }
  0x24   :  { %230 = vperm.xlu2 %659, %v606_v20  }
  0x2a   :  { %344 = vperm.xlu1 %658, %v620_v21   ;;  %235 = vperm.xlu0 %657, %v607_v22  }
  0x2c   :  { %349 = vperm.xlu2 %659, %v621_v23  }
  0x32   :  { %378 = vperm.xlu1 %658, %v625_v24   ;;  %373 = vperm.xlu0 %657, %v624_v25  }
  0x34   :  { %334 = vperm.xlu2 %659, %v618_v26  }
  0x3a   :  { %363 = vperm.xlu1 %658, %v622_v27   ;;  %339 = vperm.xlu0 %657, %v619_v28  }
  0x3c   :  { %368 = vperm.xlu2 %659, %v623_v29  }
  0x42   :  { %411 = vperm.xlu1 %658, %v627_v30   ;;  %406 = vperm.xlu0 %657, %v626_v31  }
  0x44   :  { %416 = vperm.xlu2 %659, %v628_v32  }
  0x4a   :  { %519 = vperm.xlu1 %658, %v640_v33   ;;  %421 = vperm.xlu0 %657, %v629_v34  }
  0x4c   :  { %524 = vperm.xlu2 %659, %v641_v35  }
  0x52   :  { %534 = vperm.xlu1 %658, %v643_v36   ;;  %529 = vperm.xlu0 %657, %v642_v37  }
  0x54   :  { %548 = vperm.xlu2 %659, %v644_v38  }
  0x5a   :  { %558 = vperm.xlu1 %658, %v646_v39   ;;  %553 = vperm.xlu0 %657, %v645_v40  }
  0x5c   :  { %563 = vperm.xlu2 %659, %v647_v41  }
  0x5e   :  { %v159_v19 = vpop.permute.xlu2 %158 }
  0x66   :  { %v164_v26 = vpop.permute.xlu2 %163 }
  0x6e   :  { %v149_v31 = vpop.permute.xlu2 %148 }
  0x74   :  { %v35_v43 = vpop.permute.xlu0 %34  ;;  %v45_v45 = vpop.permute.xlu1 %44 }
  0x7c   :  { %v40_v46 = vpop.permute.xlu0 %39  ;;  %v50_v58 = vpop.permute.xlu1 %49 }
  0x84   :  { %v188_v29 = vpop.permute.xlu0 %187  ;;  %v193_v32 = vpop.permute.xlu1 %192 }
  0x85   :  { %v78_v42 = vpop.f32.mrf.mxu0 }
  0x86   :  { %v821_v49 = vadd.f32 %v78_v42, %v35_v43 }
  0x88   :  { %v102_v52 = vmul.f32 %v821_v49, %v821_v49  ;;  %v88_v55 = vsel %vm62_vm0, %v821_v49, 0.0 }
  0x8a   :  { %v106_v61 = vsel %vm62_vm0, %v102_v52, 0.0 }
  0x8d   :  { %v80_v44 = vpop.f32.mrf.mxu0 }
  0x8e   :  { %v819_v47 = vadd.f32 %v80_v44, %v40_v46 }
  0x90   :  { %v103_v51 = vmul.f32 %v819_v47, %v819_v47  ;;  %v89_v53 = vsel %vm62_vm0, %v819_v47, 0.0 }
  0x91   :  { %v90_v59 = vadd.f32 %v89_v53, %v88_v55  ;;  %v183_v53 = vpop.permute.xlu2 %182 }
  0x92   :  { %v107_v56 = vsel %vm62_vm0, %v103_v51, 0.0 }
  0x93   :  { %v108_v0 = vadd.f32 %v107_v56, %v106_v61 }
  0x95   :  { %v83_v48 = vpop.f32.mrf.mxu0 }
  0x96   :  { %v84_v50 = vadd.f32 %v83_v48, %v45_v45  ;;  %v154_v45 = vpop.permute.xlu0 %153 }
  0x98   :  { %v104_v54 = vmul.f32 %v84_v50, %v84_v50  ;;  %v91_v57 = vsel %vm62_vm0, %v84_v50, 0.0 }
  0x99   :  { %v92_v1 = vadd.f32 %v91_v57, %v90_v59 }
  0x9a   :  { %v109_v62 = vsel %vm62_vm0, %v104_v54, 0.0  ;;  %v178_v54 = vpop.permute.xlu1 %177 }
  0x9b   :  { %v110_v4 = vadd.f32 %v109_v62, %v108_v0 }
  0x9d   :  { %v85_v60 = vpop.f32.mrf.mxu0 }
  0x9e   :  { %v86_v63 = vadd.f32 %v85_v60, %v50_v58 }
  0xa0   :  { %v93_v2 = vsel %vm62_vm0, %v86_v63, 0.0  ;;  %v105_v3 = vmul.f32 %v86_v63, %v86_v63 }
  0xa1   :  { %v94_v5 = vadd.f32 %v93_v2, %v92_v1  ;;  %v650_v2 = vld [vmem:[%s902_s2] sm:$0xff] }
  0xa2   :  { %v111_v6 = vsel %vm62_vm0, %v105_v3, 0.0  ;;  %v651_v3 = vld [vmem:[%s902_s2 + $0x8] sm:$0xff] }
  0xa3   :  { %v95_v7 = vrot.slane %v94_v5, 4  ;;  %v112_v8 = vadd.f32 %v111_v6, %v110_v4 }
  0xa5   :  { %v96_v9 = vadd.f32 %v95_v7, %v94_v5  ;;  %v113_v10 = vrot.slane %v112_v8, 4  ;;  %v221_v5 = vpop.permute.xlu0 %220 }
  0xa7   :  { %v97_v11 = vrot.slane %v96_v9, 2  ;;  %v114_v12 = vadd.f32 %v113_v10, %v112_v8  ;;  %v231_v8 = vpop.permute.xlu2 %230 }
  0xa9   :  { %v98_v13 = vadd.f32 %v97_v11, %v96_v9  ;;  %v115_v14 = vrot.slane %v114_v12, 2  ;;  %v226_v9 = vpop.permute.xlu1 %225 }
  0xab   :  { %v99_v15 = vrot.slane %v98_v13, 1  ;;  %v116_v16 = vadd.f32 %v115_v14, %v114_v12 }
  0xad   :  { %v100_v17 = vadd.f32 %v99_v15, %v98_v13  ;;  %v117_v18 = vrot.slane %v116_v16, 1 }
  0xaf   :  { %v101_v20 = vmul.f32 0.03125, %v100_v17  ;;  %v118_v21 = vadd.f32 %v117_v18, %v116_v16 }
  0xb1   :  { %v119_v22 = vmul.f32 0.03125, %v118_v21  ;;  %v120_v23 = vmul.f32 %v101_v20, %v101_v20  ;;  %v136_v36 = vsub.f32 %v86_v63, %v101_v20  ;;  %v135_v37 = vsub.f32 %v84_v50, %v101_v20  ;;  %v236_v21 = vpop.permute.xlu0 %235 }
  0xb2   :  { %v133_v38 = vsub.f32 %v821_v49, %v101_v20  ;;  %v134_v39 = vsub.f32 %v819_v47, %v101_v20 }
  0xb3   :  { %v121_v24 = vsub.f32 %v119_v22, %v120_v23 }
  0xb5   :  { %v122_v25 = vadd.f32 1e-05, %v121_v24 }
  0xb7   :  { %660 = vrsqrt.f32 %v122_v25  ;;  %vm129_vm2 = vweird.f32 %v122_v25 }
  0xbd   :  { %v661_v27 = vpop.eup %660 }
  0xbe   :  { %v124_v28 = vmul.f32 %v661_v27, %v122_v25  ;;  %vm130_vm1 = vweird.f32 %v661_v27 }
  0xbf   :  { %vm131_vm3 = vmor %vm129_vm2, %vm130_vm1 }
  0xc0   :  { %v125_v30 = vmul.f32 %v661_v27, %v124_v28 }
  0xc2   :  { %v126_v33 = vmul.f32 0.5, %v125_v30 }
  0xc4   :  { %v127_v34 = vsub.f32 1.5, %v126_v33 }
  0xc6   :  { %v128_v35 = vmul.f32 %v661_v27, %v127_v34 }
  0xc8   :  { %v132_v40 = vsel %vm131_vm3, %v661_v27, %v128_v35 }
  0xc9   :  { %v140_v41 = vmul.f32 %v136_v36, %v132_v40  ;;  %v139_v42 = vmul.f32 %v135_v37, %v132_v40  ;;  %v137_v43 = vmul.f32 %v133_v38, %v132_v40  ;;  %v138_v44 = vmul.f32 %v134_v39, %v132_v40 }
  0xcb   :  { %v168_v46 = vmul.f32 %v159_v19, %v139_v42  ;;  %v169_v48 = vmul.f32 %v164_v26, %v140_v41  ;;  %v166_v51 = vmul.f32 %v149_v31, %v137_v43  ;;  %v167_v52 = vmul.f32 %v154_v45, %v138_v44 }
  0xcd   :  { %v197_v55 = vadd.f32 %v188_v29, %v168_v46  ;;  %v198_v56 = vadd.f32 %v193_v32, %v169_v48  ;;  %v195_v57 = vadd.f32 %v178_v54, %v166_v51  ;;  %v196_v50 = vadd.f32 %v183_v53, %v167_v52  ;;  %v350_v54 = vpop.permute.xlu2 %349 }
  0xcf   :  { %v201_v58 = vmul.f32 0.01, %v197_v55  ;;  %v202_v49 = vmul.f32 0.01, %v198_v56  ;;  %v199_v59 = vmul.f32 0.01, %v195_v57 }
  0xd0   :  { %v200_v47 = vmul.f32 0.01, %v196_v50 }
  0xd1   :  { %v205_v60 = vmax.f32 %v197_v55, %v201_v58  ;;  %v206_v61 = vmax.f32 %v198_v56, %v202_v49  ;;  %v203_v63 = vmax.f32 %v195_v57, %v199_v59  ;;  %v345_v55 = vpop.permute.xlu1 %344 }
  0xd2   :  { %v204_v0 = vmax.f32 %v196_v50, %v200_v47  ;;  %v374_v50 = vpop.permute.xlu0 %373 }
  0xd3   :  { %v212_v62 = vpack.c.bf16 %v206_v61, %v205_v60 }
  0xd4   :  { %v211_v1 = vpack.c.bf16 %v204_v0, %v203_v63 }
  0xd5   :  { %261 = vmatpush.bf16.msra.mxu1 %v212_v62  ;;  %654 = vmatpush.bf16.msra.mxu3 %v212_v62  ;;  %v335_v49 = vpop.permute.xlu2 %334 }
  0xd9   :  { %262 = vmatpush.bf16.msra.mxu1 %v211_v1  ;;  %655 = vmatpush.bf16.msra.mxu3 %v211_v1  ;;  %v379_v59 = vpop.permute.xlu1 %378 }
  0xdc   :  { %616 = vmatmul.msk.bf16.vlgmr.msra.gmra.mxu1 %vm248_vm4, %v650_v2  ;;  %617 = vmatmul.msk.bf16.vlgmr.msra.gmra.mxu3 %vm248_vm4, %v651_v3 }
 0x159   :  { %v264_v4 = vpop.f32.mrf.mxu1 }
 0x15a   :  { %v847_v6 = vadd.f32 %v264_v4, %v221_v5 }
 0x15c   :  { %v288_v11 = vmul.f32 %v847_v6, %v847_v6  ;;  %v274_v14 = vsel %vm62_vm0, %v847_v6, 0.0 }
 0x15e   :  { %v292_v18 = vsel %vm62_vm0, %v288_v11, 0.0 }
 0x15f   :  { %v269_v7 = vpop.f32.mrf.mxu3 }
 0x160   :  { %v270_v12 = vadd.f32 %v269_v7, %v231_v8  ;;  %v340_v8 = vpop.permute.xlu0 %339 }
 0x161   :  { %v266_v10 = vpop.f32.mrf.mxu1 }
 0x162   :  { %v267_v13 = vadd.f32 %v266_v10, %v226_v9  ;;  %v290_v19 = vmul.f32 %v270_v12, %v270_v12  ;;  %v277_v24 = vsel %vm62_vm0, %v270_v12, 0.0 }
 0x164   :  { %v275_v15 = vsel %vm62_vm0, %v267_v13, 0.0  ;;  %v289_v16 = vmul.f32 %v267_v13, %v267_v13  ;;  %v295_v27 = vsel %vm62_vm0, %v290_v19, 0.0 }
 0x165   :  { %v276_v17 = vadd.f32 %v275_v15, %v274_v14  ;;  %v369_v15 = vpop.permute.xlu2 %368 }
 0x166   :  { %v293_v20 = vsel %vm62_vm0, %v289_v16, 0.0  ;;  %v364_v16 = vpop.permute.xlu1 %363 }
 0x167   :  { %v294_v22 = vadd.f32 %v293_v20, %v292_v18  ;;  %v271_v23 = vpop.f32.mrf.mxu3  ;;  %v278_v26 = vadd.f32 %v277_v24, %v276_v17 }
 0x168   :  { %v272_v25 = vadd.f32 %v271_v23, %v236_v21 }
 0x169   :  { %v296_v31 = vadd.f32 %v295_v27, %v294_v22 }
 0x16a   :  { %v279_v28 = vsel %vm62_vm0, %v272_v25, 0.0  ;;  %v291_v29 = vmul.f32 %v272_v25, %v272_v25 }
 0x16b   :  { %v280_v30 = vadd.f32 %v279_v28, %v278_v26  ;;  %v652_v28 = vld [vmem:[%s903_s3] sm:$0xff] }
 0x16c   :  { %v297_v32 = vsel %vm62_vm0, %v291_v29, 0.0  ;;  %v653_v29 = vld [vmem:[%s903_s3 + $0x8] sm:$0xff] }
 0x16d   :  { %v281_v33 = vrot.slane %v280_v30, 4  ;;  %v298_v34 = vadd.f32 %v297_v32, %v296_v31 }
 0x16e   :  { %v412_v32 = vpop.permute.xlu1 %411 }
 0x16f   :  { %v282_v35 = vadd.f32 %v281_v33, %v280_v30  ;;  %v299_v36 = vrot.slane %v298_v34, 4  ;;  %v407_v33 = vpop.permute.xlu0 %406 }
 0x171   :  { %v283_v37 = vrot.slane %v282_v35, 2  ;;  %v300_v38 = vadd.f32 %v299_v36, %v298_v34 }
 0x173   :  { %v284_v39 = vadd.f32 %v283_v37, %v282_v35  ;;  %v301_v40 = vrot.slane %v300_v38, 2  ;;  %v417_v35 = vpop.permute.xlu2 %416 }
 0x175   :  { %v285_v41 = vrot.slane %v284_v39, 1  ;;  %v302_v42 = vadd.f32 %v301_v40, %v300_v38 }
 0x177   :  { %v286_v43 = vadd.f32 %v285_v41, %v284_v39  ;;  %v303_v44 = vrot.slane %v302_v42, 1 }
 0x179   :  { %v287_v45 = vmul.f32 0.03125, %v286_v43  ;;  %v304_v46 = vadd.f32 %v303_v44, %v302_v42 }
 0x17b   :  { %v305_v48 = vmul.f32 0.03125, %v304_v46  ;;  %v306_v51 = vmul.f32 %v287_v45, %v287_v45  ;;  %v322_v62 = vsub.f32 %v272_v25, %v287_v45  ;;  %v321_v63 = vsub.f32 %v270_v12, %v287_v45  ;;  %v422_v46 = vpop.permute.xlu0 %421 }
 0x17c   :  { %v319_v0 = vsub.f32 %v847_v6, %v287_v45  ;;  %v320_v1 = vsub.f32 %v267_v13, %v287_v45 }
 0x17d   :  { %v307_v52 = vsub.f32 %v305_v48, %v306_v51 }
 0x17f   :  { %v308_v53 = vadd.f32 1e-05, %v307_v52 }
 0x181   :  { %662 = vrsqrt.f32 %v308_v53  ;;  %vm315_vm6 = vweird.f32 %v308_v53 }
 0x187   :  { %v663_v56 = vpop.eup %662 }
 0x188   :  { %v310_v57 = vmul.f32 %v663_v56, %v308_v53  ;;  %vm316_vm5 = vweird.f32 %v663_v56 }
 0x189   :  { %vm317_vm7 = vmor %vm315_vm6, %vm316_vm5 }
 0x18a   :  { %v311_v58 = vmul.f32 %v663_v56, %v310_v57 }
 0x18c   :  { %v312_v47 = vmul.f32 0.5, %v311_v58 }
 0x18e   :  { %v313_v60 = vsub.f32 1.5, %v312_v47 }
 0x190   :  { %v314_v61 = vmul.f32 %v663_v56, %v313_v60 }
 0x192   :  { %v318_v2 = vsel %vm317_vm7, %v663_v56, %v314_v61 }
 0x193   :  { %v326_v3 = vmul.f32 %v322_v62, %v318_v2  ;;  %v325_v4 = vmul.f32 %v321_v63, %v318_v2  ;;  %v323_v5 = vmul.f32 %v319_v0, %v318_v2  ;;  %v324_v7 = vmul.f32 %v320_v1, %v318_v2 }
 0x195   :  { %v354_v9 = vmul.f32 %v345_v55, %v325_v4  ;;  %v355_v10 = vmul.f32 %v350_v54, %v326_v3  ;;  %v352_v11 = vmul.f32 %v335_v49, %v323_v5  ;;  %v353_v14 = vmul.f32 %v340_v8, %v324_v7 }
 0x197   :  { %v383_v17 = vadd.f32 %v374_v50, %v354_v9  ;;  %v384_v18 = vadd.f32 %v379_v59, %v355_v10  ;;  %v381_v19 = vadd.f32 %v364_v16, %v352_v11  ;;  %v382_v20 = vadd.f32 %v369_v15, %v353_v14  ;;  %v525_v16 = vpop.permute.xlu2 %524 }
 0x199   :  { %v387_v12 = vmul.f32 0.01, %v383_v17  ;;  %v388_v21 = vmul.f32 0.01, %v384_v18  ;;  %v385_v6 = vmul.f32 0.01, %v381_v19 }
 0x19a   :  { %v386_v13 = vmul.f32 0.01, %v382_v20 }
 0x19b   :  { %v391_v22 = vmax.f32 %v383_v17, %v387_v12  ;;  %v392_v23 = vmax.f32 %v384_v18, %v388_v21  ;;  %v389_v25 = vmax.f32 %v381_v19, %v385_v6  ;;  %v520_v17 = vpop.permute.xlu1 %519  ;;  %v530_v6 = vpop.permute.xlu0 %529 }
 0x19c   :  { %v390_v26 = vmax.f32 %v382_v20, %v386_v13 }
 0x19d   :  { %v398_v24 = vpack.c.bf16 %v392_v23, %v391_v22 }
 0x19e   :  { %v397_v27 = vpack.c.bf16 %v390_v26, %v389_v25 }
 0x19f   :  { %446 = vmatpush.bf16.msra.mxu2 %v398_v24  ;;  %v549_v12 = vpop.permute.xlu2 %548 }
 0x1a3   :  { %447 = vmatpush.bf16.msra.mxu2 %v397_v27  ;;  %v535_v21 = vpop.permute.xlu1 %534 }
 0x1a6   :  { %638 = vmatmul.msk.bf16.vlgmr.msra.gmra.mxu2 %vm248_vm4, %v652_v28 }
 0x1b6   :  { %639 = vmatmul.msk.bf16.gmra.mxu2 %vm248_vm4, %v653_v29 }
 0x229   :  { %v449_v30 = vpop.f32.mrf.mxu2 }
 0x22a   :  { %v450_v37 = vadd.f32 %v449_v30, %v407_v33  ;;  %v564_v33 = vpop.permute.xlu2 %563 }
 0x22c   :  { %v473_v40 = vmul.f32 %v450_v37, %v450_v37  ;;  %v459_v43 = vsel %vm62_vm0, %v450_v37, 0.0 }
 0x22e   :  { %v477_v52 = vsel %vm62_vm0, %v473_v40, 0.0 }
 0x231   :  { %v451_v31 = vpop.f32.mrf.mxu2 }
 0x232   :  { %v869_v34 = vadd.f32 %v451_v31, %v412_v32 }
 0x234   :  { %v474_v39 = vmul.f32 %v869_v34, %v869_v34  ;;  %v460_v41 = vsel %vm62_vm0, %v869_v34, 0.0 }
 0x235   :  { %v461_v48 = vadd.f32 %v460_v41, %v459_v43  ;;  %v559_v41 = vpop.permute.xlu1 %558 }
 0x236   :  { %v478_v44 = vsel %vm62_vm0, %v474_v39, 0.0 }
 0x237   :  { %v479_v55 = vadd.f32 %v478_v44, %v477_v52 }
 0x239   :  { %v454_v36 = vpop.f32.mrf.mxu2 }
 0x23a   :  { %v455_v38 = vadd.f32 %v454_v36, %v417_v35 }
 0x23c   :  { %v475_v42 = vmul.f32 %v455_v38, %v455_v38  ;;  %v462_v45 = vsel %vm62_vm0, %v455_v38, 0.0 }
 0x23d   :  { %v463_v56 = vadd.f32 %v462_v45, %v461_v48 }
 0x23e   :  { %v480_v53 = vsel %vm62_vm0, %v475_v42, 0.0  ;;  %v554_v42 = vpop.permute.xlu0 %553 }
 0x23f   :  { %v481_v58 = vadd.f32 %v480_v53, %v479_v55 }
 0x241   :  { %v456_v51 = vpop.f32.mrf.mxu2 }
 0x242   :  { %v457_v54 = vadd.f32 %v456_v51, %v422_v46 }
 0x244   :  { %v464_v57 = vsel %vm62_vm0, %v457_v54, 0.0  ;;  %v476_v50 = vmul.f32 %v457_v54, %v457_v54 }
 0x245   :  { %v465_v49 = vadd.f32 %v464_v57, %v463_v56 }
 0x246   :  { %v482_v59 = vsel %vm62_vm0, %v476_v50, 0.0 }
 0x247   :  { %v466_v47 = vrot.slane %v465_v49, 4  ;;  %v483_v60 = vadd.f32 %v482_v59, %v481_v58 }
 0x249   :  { %v467_v61 = vadd.f32 %v466_v47, %v465_v49  ;;  %v484_v62 = vrot.slane %v483_v60, 4 }
 0x24b   :  { %v468_v63 = vrot.slane %v467_v61, 2  ;;  %v485_v0 = vadd.f32 %v484_v62, %v483_v60 }
 0x24d   :  { %v469_v1 = vadd.f32 %v468_v63, %v467_v61  ;;  %v486_v2 = vrot.slane %v485_v0, 2 }
 0x24f   :  { %v470_v3 = vrot.slane %v469_v1, 1  ;;  %v487_v4 = vadd.f32 %v486_v2, %v485_v0 }
 0x251   :  { %v471_v5 = vadd.f32 %v470_v3, %v469_v1  ;;  %v488_v7 = vrot.slane %v487_v4, 1 }
 0x253   :  { %v472_v8 = vmul.f32 0.03125, %v471_v5  ;;  %v489_v9 = vadd.f32 %v488_v7, %v487_v4 }
 0x255   :  { %v490_v10 = vmul.f32 0.03125, %v489_v9  ;;  %v491_v11 = vmul.f32 %v472_v8, %v472_v8  ;;  %v504_v24 = vsub.f32 %v450_v37, %v472_v8  ;;  %v505_v25 = vsub.f32 %v869_v34, %v472_v8 }
 0x256   :  { %v506_v26 = vsub.f32 %v455_v38, %v472_v8  ;;  %v507_v27 = vsub.f32 %v457_v54, %v472_v8 }
 0x257   :  { %v492_v14 = vsub.f32 %v490_v10, %v491_v11 }
 0x259   :  { %v493_v15 = vadd.f32 1e-05, %v492_v14 }
 0x25b   :  { %664 = vrsqrt.f32 %v493_v15  ;;  %vm500_vm9 = vweird.f32 %v493_v15 }
 0x261   :  { %v665_v18 = vpop.eup %664 }
 0x262   :  { %v495_v19 = vmul.f32 %v665_v18, %v493_v15  ;;  %vm501_vm8 = vweird.f32 %v665_v18 }
 0x263   :  { %vm502_vm10 = vmor %vm500_vm9, %vm501_vm8 }
 0x264   :  { %v496_v20 = vmul.f32 %v665_v18, %v495_v19 }
 0x266   :  { %v497_v13 = vmul.f32 0.5, %v496_v20 }
 0x268   :  { %v498_v22 = vsub.f32 1.5, %v497_v13 }
 0x26a   :  { %v499_v23 = vmul.f32 %v665_v18, %v498_v22 }
 0x26c   :  { %v503_v28 = vsel %vm502_vm10, %v665_v18, %v499_v23 }
 0x26d   :  { %v508_v29 = vmul.f32 %v504_v24, %v503_v28  ;;  %v509_v30 = vmul.f32 %v505_v25, %v503_v28  ;;  %v510_v31 = vmul.f32 %v506_v26, %v503_v28  ;;  %v511_v32 = vmul.f32 %v507_v27, %v503_v28 }
 0x26f   :  { %v537_v35 = vmul.f32 %v520_v17, %v508_v29  ;;  %v538_v36 = vmul.f32 %v525_v16, %v509_v30  ;;  %v539_v39 = vmul.f32 %v530_v6, %v510_v31  ;;  %v540_v40 = vmul.f32 %v535_v21, %v511_v32 }
 0x271   :  { %v566_v43 = vadd.f32 %v549_v12, %v537_v35  ;;  %v567_v44 = vadd.f32 %v554_v42, %v538_v36  ;;  %v568_v45 = vadd.f32 %v559_v41, %v539_v39  ;;  %v569_v37 = vadd.f32 %v564_v33, %v540_v40 }
 0x273   :  { %v570_v46 = vmul.f32 0.01, %v566_v43  ;;  %v571_v34 = vmul.f32 0.01, %v567_v44  ;;  %v572_v38 = vmul.f32 0.01, %v568_v45 }
 0x274   :  { %v573_v48 = vmul.f32 0.01, %v569_v37 }
 0x275   :  { %v574_v51 = vmax.f32 %v566_v43, %v570_v46  ;;  %v575_v52 = vmax.f32 %v567_v44, %v571_v34  ;;  %v576_v53 = vmax.f32 %v568_v45, %v572_v38 }
 0x276   :  { %v577_v54 = vmax.f32 %v569_v37, %v573_v48 }
 0x277   :  { %578 = vst.msk [vmem:[%s904_s5] sm:$0xff] %vm62_vm0, %v574_v51 }
 0x278   :  { %579 = vst.msk [vmem:[%s904_s5 + $0x8] sm:$0xff] %vm62_vm0, %v575_v52 }
 0x279   :  { %580 = vst.msk [vmem:[%s904_s5 + $0x10] sm:$0xff] %vm62_vm0, %v576_v53 }
 0x27a   :  { %581 = vst.msk [vmem:[%s904_s5 + $0x18] sm:$0xff] %vm62_vm0, %v577_v54 }

</bundles_post_ra>
